<compile_context>
chip_gen: v7x
topology: tpu7x:2x2x1
jax: 0.10.0
libtpu: 0.0.40
codegen_flags: <defaults>
</compile_context>

<pallas_src>
import functools

import jax
import jax.numpy as jnp
from jax.experimental import pallas as pl
from jax.experimental.pallas import tpu as pltpu


def _round_up(x: int, m: int) -> int:
    return (x + m - 1) // m * m


# ----------------------------- Pallas kernel --------------------------------
def _critic_kernel(state_ref, action_ref, slab_ref, q_ref, *,
                   num_inputs, num_actions, h2,
                   off_w1s, off_w1a, off_w2, off_w3, off_b):
    # All slab slices below are static, 8-row aligned and full lane width ->
    # plain unmasked vector loads (no copies, no masking).
    w1s = slab_ref[off_w1s:off_w1s + num_inputs, :]      # [num_inputs,  2H]
    w1a = slab_ref[off_w1a:off_w1a + num_actions, :]     # [num_actions, 2H]
    w2 = slab_ref[off_w2:off_w2 + h2, :]                 # [2H, 2H] block-diag
    w3 = slab_ref[off_w3:off_w3 + h2, :]                 # [2H, 2H] (cols 0/1 live)
    b1 = slab_ref[off_b + 0:off_b + 1, :]                # [1, 2H]
    b2 = slab_ref[off_b + 1:off_b + 2, :]                # [1, 2H]
    b3 = slab_ref[off_b + 2:off_b + 3, :]                # [1, 2H] (cols 0/1 live)

    # Layer 1 (fused twin heads; the concat is eliminated by splitting the
    # W1||W4 rows into a state part and an action part).
    h = (jnp.dot(state_ref[...], w1s, preferred_element_type=jnp.float32)
         + jnp.dot(action_ref[...], w1a, preferred_element_type=jnp.float32)
         + b1)
    h = jnp.maximum(h, 0.0)

    # Layer 2: block-diagonal [2H, 2H] -> one matmul covers both Q heads.
    h = jnp.dot(h, w2, preferred_element_type=jnp.float32) + b2
    h = jnp.maximum(h, 0.0)

    # Layer 3: q1 in column 0, q2 in column 1 (remaining columns are zero).
    q = jnp.dot(h, w3, preferred_element_type=jnp.float32)[:, 0:2] + b3[:, 0:2]

    # Final ReLU matches the PyTorch module (F.relu on linear3 / linear6).
    q_ref[...] = jnp.maximum(q, 0.0)


# ------------------------------ wrapper --------------------------------------
def make_critic_forward(num_inputs, num_actions, hidden_dim):
    """Builds (jitted forward fn, static slab layout) for fixed dims."""
    h2 = 2 * hidden_dim
    off_w1s = 0
    off_w1a = _round_up(num_inputs, 8)
    off_w2 = off_w1a + _round_up(num_actions, 8)
    off_w3 = off_w2 + _round_up(h2, 8)
    off_b = off_w3 + _round_up(h2, 8)
    n_rows = off_b + 8                                   # 3 bias rows, padded

    layout = dict(off_w1s=off_w1s, off_w1a=off_w1a, off_w2=off_w2,
                  off_w3=off_w3, off_b=off_b, n_rows=n_rows, h2=h2)

    kernel = functools.partial(
        _critic_kernel,
        num_inputs=num_inputs, num_actions=num_actions, h2=h2,
        off_w1s=off_w1s, off_w1a=off_w1a, off_w2=off_w2, off_w3=off_w3,
        off_b=off_b)

    vmem = pl.BlockSpec(memory_space=pltpu.MemorySpace.VMEM)
    in_dim = num_inputs + num_actions

    @jax.jit
    def forward(state, action, slab):
        B = state.shape[0]
        flops = 2 * B * (in_dim * h2 + h2 * h2 + h2 * h2)
        bytes_accessed = 4 * (state.size + action.size + slab.size + B * 2)
        q = pl.pallas_call(
            kernel,
            out_shape=jax.ShapeDtypeStruct((B, 2), jnp.float32),
            in_specs=[vmem, vmem, vmem],
            out_specs=vmem,
            cost_estimate=pl.CostEstimate(flops=flops, transcendentals=0,
                                          bytes_accessed=bytes_accessed),
        )(state, action, slab)
        # Plain-JAX slicing of the packed output back into the module's (q1, q2).
        return q[:, 0:1], q[:, 1:2]

    return forward, layout


# --------------------------- parameter init ----------------------------------
def xavier_uniform(key, fan_in, fan_out):
    # gain=1, same as torch.nn.init.xavier_uniform_
    limit = jnp.sqrt(6.0 / (fan_in + fan_out))
    # stored transposed vs. PyTorch: shape (in, out) so the kernel does x @ W
    return jax.random.uniform(key, (fan_in, fan_out), jnp.float32, -limit, limit)


def init_critic_params(key, num_inputs, num_actions, hidden_dim):
    """Per-layer params in the same logical layout as the PyTorch module."""
    in_dim = num_inputs + num_actions
    keys = jax.random.split(key, 6)
    dims = [(in_dim, hidden_dim), (hidden_dim, hidden_dim), (hidden_dim, 1),
            (in_dim, hidden_dim), (hidden_dim, hidden_dim), (hidden_dim, 1)]
    params = {}
    for i, ((fi, fo), k) in enumerate(zip(dims, keys), start=1):
        params[f"w{i}"] = xavier_uniform(k, fi, fo)
        params[f"b{i}"] = jnp.zeros((fo,), jnp.float32)    # constant_(bias, 0)
    return params


def pack_critic_params(params, num_inputs, num_actions, hidden_dim, layout):
    """One-time host-side twin-Q fusion into a single weight/bias slab."""
    H = hidden_dim
    h2 = layout["h2"]
    slab = jnp.zeros((layout["n_rows"], h2), jnp.float32)

    # Layer 1: [in_dim, 2H] = W1 || W4; state rows and action rows stored at
    # separate (sublane-aligned) offsets so the kernel never concatenates.
    w1_full = jnp.concatenate([params["w1"], params["w4"]], axis=1)
    slab = slab.at[layout["off_w1s"]:layout["off_w1s"] + num_inputs, :].set(
        w1_full[:num_inputs])
    slab = slab.at[layout["off_w1a"]:layout["off_w1a"] + num_actions, :].set(
        w1_full[num_inputs:])

    # Layer 2: block-diagonal [2H, 2H].
    o2 = layout["off_w2"]
    slab = slab.at[o2:o2 + H, 0:H].set(params["w2"])
    slab = slab.at[o2 + H:o2 + 2 * H, H:2 * H].set(params["w5"])

    # Layer 3: column 0 only sees the q1 hidden, column 1 only the q2 hidden.
    o3 = layout["off_w3"]
    slab = slab.at[o3:o3 + H, 0:1].set(params["w3"])
    slab = slab.at[o3 + H:o3 + 2 * H, 1:2].set(params["w6"])

    # Biases: row 0 = b1||b4, row 1 = b2||b5, row 2[:2] = [b3, b6].
    ob = layout["off_b"]
    slab = slab.at[ob, :].set(jnp.concatenate([params["b1"], params["b4"]]))
    slab = slab.at[ob + 1, :].set(jnp.concatenate([params["b2"], params["b5"]]))
    slab = slab.at[ob + 2, 0].set(params["b3"][0])
    slab = slab.at[ob + 2, 1].set(params["b6"][0])
    return slab


# --------------------------------- main ---------------------------------------
if __name__ == "__main__":
    num_inputs, num_actions, hidden_dim = 24, 8, 32
    batch = 8

    key = jax.random.PRNGKey(0)
    k_state, k_action, k_params = jax.random.split(key, 3)

    state = jax.random.normal(k_state, (batch, num_inputs), jnp.float32)
    action = jax.random.normal(k_action, (batch, num_actions), jnp.float32)

    params = init_critic_params(k_params, num_inputs, num_actions, hidden_dim)
    critic_forward, layout = make_critic_forward(num_inputs, num_actions,
                                                 hidden_dim)
    slab = pack_critic_params(params, num_inputs, num_actions, hidden_dim,
                              layout)

    q1, q2 = critic_forward(state, action, slab)
    jax.block_until_ready((q1, q2))

    # Sanity check against a pure-JAX reference using the UNpacked params.
    def ref(state, action, p):
        xu = jnp.concatenate([state, action], axis=1)

        def mlp3(wA, bA, wB, bB, wC, bC):
            h = jnp.maximum(xu @ wA + bA, 0.0)
            h = jnp.maximum(h @ wB + bB, 0.0)
            return jnp.maximum(h @ wC + bC, 0.0)

        return (mlp3(p["w1"], p["b1"], p["w2"], p["b2"], p["w3"], p["b3"]),
                mlp3(p["w4"], p["b4"], p["w5"], p["b5"], p["w6"], p["b6"]))

    r1, r2 = ref(state, action, params)
    assert q1.shape == (batch, 1) and q2.shape == (batch, 1)
    assert jnp.allclose(q1, r1, atol=1e-5) and jnp.allclose(q2, r2, atol=1e-5)

    print("KERNEL_OK")
</pallas_src>

<mosaic_0001>
module attributes {stable_mosaic.version = 11 : i64} {
  func.func @_critic_kernel(%arg0: memref<8x24xf32, #tpu.memory_space<vmem>>, %arg1: memref<8x8xf32, #tpu.memory_space<vmem>>, %arg2: memref<168x64xf32, #tpu.memory_space<vmem>>, %arg3: memref<8x2xf32, #tpu.memory_space<vmem>>) attributes {dimension_semantics = [], scalar_prefetch = 0 : i64, scratch_operands = 0 : i64, tpu.core_type = #tpu.core_type<tc>} {
    %c0 = arith.constant 0 : index
    %c0_0 = arith.constant 0 : index
    %0 = vector.load %arg2[%c0, %c0_0] : memref<168x64xf32, #tpu.memory_space<vmem>>, vector<24x64xf32>
    %c24 = arith.constant 24 : index
    %c0_1 = arith.constant 0 : index
    %1 = vector.load %arg2[%c24, %c0_1] : memref<168x64xf32, #tpu.memory_space<vmem>>, vector<8x64xf32>
    %c32 = arith.constant 32 : index
    %c0_2 = arith.constant 0 : index
    %2 = vector.load %arg2[%c32, %c0_2] : memref<168x64xf32, #tpu.memory_space<vmem>>, vector<64x64xf32>
    %c96 = arith.constant 96 : index
    %c0_3 = arith.constant 0 : index
    %3 = vector.load %arg2[%c96, %c0_3] : memref<168x64xf32, #tpu.memory_space<vmem>>, vector<64x64xf32>
    %c160 = arith.constant 160 : index
    %c0_4 = arith.constant 0 : index
    %4 = vector.load %arg2[%c160, %c0_4] : memref<168x64xf32, #tpu.memory_space<vmem>>, vector<1x64xf32>
    %c161 = arith.constant 161 : index
    %c0_5 = arith.constant 0 : index
    %5 = vector.load %arg2[%c161, %c0_5] : memref<168x64xf32, #tpu.memory_space<vmem>>, vector<1x64xf32>
    %c162 = arith.constant 162 : index
    %c0_6 = arith.constant 0 : index
    %6 = vector.load %arg2[%c162, %c0_6] : memref<168x64xf32, #tpu.memory_space<vmem>>, vector<1x64xf32>
    %c0_7 = arith.constant 0 : index
    %c0_8 = arith.constant 0 : index
    %7 = vector.load %arg0[%c0_7, %c0_8] : memref<8x24xf32, #tpu.memory_space<vmem>>, vector<8x24xf32>
    %cst = arith.constant dense<0.000000e+00> : vector<8x64xf32>
    %8 = tpu.matmul %7, %0, %cst {dimension_numbers = #tpu.dot_dimension_numbers<[1], [0], [0], [1], [0, 0, 1, 1], [], []>} : vector<8x24xf32>, vector<24x64xf32>, vector<8x64xf32> -> vector<8x64xf32>
    %c0_9 = arith.constant 0 : index
    %c0_10 = arith.constant 0 : index
    %9 = vector.load %arg1[%c0_9, %c0_10] : memref<8x8xf32, #tpu.memory_space<vmem>>, vector<8x8xf32>
    %cst_11 = arith.constant dense<0.000000e+00> : vector<8x64xf32>
    %10 = tpu.matmul %9, %1, %cst_11 {dimension_numbers = #tpu.dot_dimension_numbers<[1], [0], [0], [1], [0, 0, 1, 1], [], []>} : vector<8x8xf32>, vector<8x64xf32>, vector<8x64xf32> -> vector<8x64xf32>
    %11 = arith.addf %8, %10 : vector<8x64xf32>
    %12 = vector.broadcast %4 : vector<1x64xf32> to vector<8x64xf32>
    %13 = arith.addf %11, %12 : vector<8x64xf32>
    %cst_12 = arith.constant 0.000000e+00 : f32
    %14 = vector.broadcast %cst_12 : f32 to vector<8x64xf32>
    %15 = arith.maximumf %13, %14 : vector<8x64xf32>
    %cst_13 = arith.constant dense<0.000000e+00> : vector<8x64xf32>
    %16 = tpu.matmul %15, %2, %cst_13 {dimension_numbers = #tpu.dot_dimension_numbers<[1], [0], [0], [1], [0, 0, 1, 1], [], []>} : vector<8x64xf32>, vector<64x64xf32>, vector<8x64xf32> -> vector<8x64xf32>
    %17 = vector.broadcast %5 : vector<1x64xf32> to vector<8x64xf32>
    %18 = arith.addf %16, %17 : vector<8x64xf32>
    %cst_14 = arith.constant 0.000000e+00 : f32
    %19 = vector.broadcast %cst_14 : f32 to vector<8x64xf32>
    %20 = arith.maximumf %18, %19 : vector<8x64xf32>
    %cst_15 = arith.constant dense<0.000000e+00> : vector<8x64xf32>
    %21 = tpu.matmul %20, %3, %cst_15 {dimension_numbers = #tpu.dot_dimension_numbers<[1], [0], [0], [1], [0, 0, 1, 1], [], []>} : vector<8x64xf32>, vector<64x64xf32>, vector<8x64xf32> -> vector<8x64xf32>
    %22 = vector.extract_strided_slice %21 {offsets = [0, 0], sizes = [8, 2], strides = [1, 1]} : vector<8x64xf32> to vector<8x2xf32>
    %23 = vector.extract_strided_slice %6 {offsets = [0, 0], sizes = [1, 2], strides = [1, 1]} : vector<1x64xf32> to vector<1x2xf32>
    %24 = vector.broadcast %23 : vector<1x2xf32> to vector<8x2xf32>
    %25 = arith.addf %22, %24 : vector<8x2xf32>
    %cst_16 = arith.constant 0.000000e+00 : f32
    %26 = vector.broadcast %cst_16 : f32 to vector<8x2xf32>
    %27 = arith.maximumf %25, %26 : vector<8x2xf32>
    %c0_17 = arith.constant 0 : index
    %c0_18 = arith.constant 0 : index
    %28 = vector.load %arg3[%c0_17, %c0_18] : memref<8x2xf32, #tpu.memory_space<vmem>>, vector<8x2xf32>
    tpu.vector_store %arg3[%c0_17, %c0_18], %27 {strides = array<i32>} : memref<8x2xf32, #tpu.memory_space<vmem>>, vector<8x2xf32>,
    return
  }
}

</mosaic_0001>

<bundles_post_ra>
// kernel: forward.1
= control target key start
LH: loop header
LB: loop body
LE: loop exit
PB: predicated region body
PF: predicated region fallthrough
CT: control target
= control target key end

     0   :  { %vm39_vm0 = vcmask 64512   ;;  %v470_v0 = vmov 0.0|0.0   ;;  %v471_v3 = vmov 0.0   ;;  %vm472_vm1 = vmmov 0   ;;  %s575_s2 = inlined_call_operand.vmem [shape: f32[168,64], index: 2, kind: input, shape index: {}]   ;;  %s576_s1 = inlined_call_operand.vmem [shape: f32[8,8], index: 1, kind: input, shape index: {}]   ;;  %s577_s0 = inlined_call_operand.vmem [shape: f32[8,24], index: 0, kind: input, shape index: {}]   ;;  %s578_s3 = inlined_call_operand.vmem [shape: f32[8,2], index: 3, kind: output, shape index: {}]  }
   0x1   :  { %440 = vmatprep.subr.bf16.mxu1 %v470_v0  ;;  %v14_v1 = vld [vmem:[%s575_s2] sm:$0xff]  ;;  %v15_v2 = vld [vmem:[%s575_s2 + $0x8] sm:$0xff]  ;;  %388 = vmatprep.subr.mxu0 %v471_v3  ;;  %v17_v4 = vld [vmem:[%s575_s2 + $0x18] sm:$0xff]  ;;  %vm113_vm2 = vcmask 195584   ;;  %vm197_vm3 = vcmask 523264   ;;  %vm351_vm4 = vcmask 15360  }
   0x2   :  { %v441_v5 = vpack.c.bf16 %v15_v2, %v14_v1  ;;  %389 = vmatpush3.msra.mxu0 %v17_v4  ;;  %390 = vmatprep.mubr.msk.f32.mxu0 %vm472_vm1, %v471_v3  ;;  %v38_v6 = vld [vmem:[%s576_s1] sm:$0xff]  ;;  %v19_v8 = vld [vmem:[%s575_s2 + $0x28] sm:$0xff]  ;;  %v20_v9 = vld [vmem:[%s575_s2 + $0x30] sm:$0xff] }
   0x3   :  { %391 = vmatmul.mubr.msk.f32.vlgmr.msra.gmra.mrb[0].mxu0 %vm39_vm0, %v38_v6  ;;  %399 = vmatprep.mubr.msk.f32.mxu1 %vm472_vm1, %v471_v3  ;;  %v18_v7 = vld [vmem:[%s575_s2 + $0x20] sm:$0xff]  ;;  %v21_v11 = vld [vmem:[%s575_s2 + $0x38] sm:$0xff]  ;;  %v16_v12 = vld [vmem:[%s575_s2 + $0x10] sm:$0xff] }
   0x4   :  { %442 = vmatpush3.bf16.msra.mxu1 %v441_v5  ;;  %443 = vmatprep.subr.bf16.mxu0 %v470_v0  ;;  %v444_v10 = vpack.c.bf16 %v19_v8, %v18_v7  ;;  %v37_v13 = vld [vmem:[%s577_s0] sm:$0xff]  ;;  %v447_v14 = vpack.c.bf16 %v21_v11, %v20_v9  ;;  %v23_v16 = vld [vmem:[%s575_s2 + $0x48] sm:$0xff]  ;;  %v24_v18 = vld [vmem:[%s575_s2 + $0x50] sm:$0xff] }
   0x5   :  { %397 = vmatprep.subr.mxu1 %v471_v3  ;;  %418 = vmatprep.mubr.msk.f32.mxu0 %vm472_vm1, %v471_v3  ;;  %v22_v15 = vld [vmem:[%s575_s2 + $0x40] sm:$0xff]  ;;  %v25_v19 = vld [vmem:[%s575_s2 + $0x58] sm:$0xff]  ;;  %v27_v22 = vld [vmem:[%s575_s2 + $0x68] sm:$0xff] }
   0x6   :  { %445 = vmatpush3.bf16.msra.mxu0 %v444_v10  ;;  %v450_v17 = vpack.c.bf16 %v23_v16, %v22_v15  ;;  %v453_v20 = vpack.c.bf16 %v25_v19, %v24_v18  ;;  %v26_v21 = vld [vmem:[%s575_s2 + $0x60] sm:$0xff]  ;;  %v28_v23 = vld [vmem:[%s575_s2 + $0x70] sm:$0xff]  ;;  %v29_v25 = vld [vmem:[%s575_s2 + $0x78] sm:$0xff] }
   0x7   :  { %446 = vmatprep.subr.bf16.mxu0 %v470_v0  ;;  %v456_v24 = vpack.c.bf16 %v27_v22, %v26_v21  ;;  %v459_v26 = vpack.c.bf16 %v29_v25, %v28_v23  ;;  %v30_v27 = vld [vmem:[%s575_s2 + $0x80] sm:$0xff]  ;;  %v31_v28 = vld [vmem:[%s575_s2 + $0x88] sm:$0xff]  ;;  %v32_v38 = vld [vmem:[%s575_s2 + $0x90] sm:$0xff] }
   0x8   :  { %398 = vmatpush3.msra.mxu1 %v16_v12  ;;  %v462_v29 = vpack.c.bf16 %v31_v28, %v30_v27  ;;  %v359_v32 = vld [vmem:[%s575_s2 + $0xa0] ss:$0 sm:$0xff]  ;;  %v33_v39 = vld [vmem:[%s575_s2 + $0x98] sm:$0xff]  ;;  %v360_v41 = vld [vmem:[%s575_s2 + $0xa1] ss:$0 sm:$0xff] }
   0x9   :  { %400 = vmatmul.mubr.msk.f32.vlgmr.msra.gmra.mrb[0].mxu1 %vm113_vm2, %v37_v13  ;;  %455 = vmatprep.subr.bf16.mxu1 %v470_v0  ;;  %v465_v40 = vpack.c.bf16 %v33_v39, %v32_v38  ;;  %v363_v46 = vld [vmem:[%s575_s2 + $0xa2] ss:$0 sm:$0xff] }
   0xa   :  { %448 = vmatpush3.bf16.msra.mxu0 %v447_v14  ;;  %437 = vmatprep.mubr.msk.f32.mxu1 %vm472_vm1, %v471_v3 }
   0xb   :  { %449 = vmatprep.subr.bf16.mxu0 %v470_v0  ;;  %457 = vmatpush3.bf16.msra.mxu1 %v456_v24 }
   0xc   :  { %458 = vmatprep.subr.bf16.mxu1 %v470_v0 }
   0xe   :  { %451 = vmatpush3.bf16.msra.mxu0 %v450_v17 }
   0xf   :  { %452 = vmatprep.subr.bf16.mxu0 %v470_v0  ;;  %460 = vmatpush3.bf16.msra.mxu1 %v459_v26 }
  0x10   :  { %461 = vmatprep.subr.bf16.mxu1 %v470_v0 }
  0x12   :  { %454 = vmatpush3.bf16.msra.mxu0 %v453_v20 }
  0x13   :  { %463 = vmatpush3.bf16.msra.mxu1 %v462_v29 }
  0x14   :  { %464 = vmatprep.subr.bf16.mxu1 %v470_v0 }
  0x17   :  { %466 = vmatpush3.bf16.msra.mxu1 %v465_v40 }
  0xd6   :  { %v109_v30 = vpop.f32.mrb[0].mxu0 }
  0xd7   :  { %v392_v31 = vpop.f32.mrb[1].mxu0 }
  0xdc   :  { %v183_v33 = vpop.f32.mrb[0].mxu1 }
  0xdd   :  { %v184_v34 = vadd.f32 %v183_v33, %v109_v30  ;;  %v401_v35 = vpop.f32.mrb[1].mxu1 }
  0xdf   :  { %v191_v36 = vadd.f32 %v359_v32, %v184_v34 }
  0xe1   :  { %v192_v37 = vmax.f32 %v191_v36, 0.0 }
  0xe3   :  { %419 = vmatmul.mubr.msk.f32.vlgmr.msra.gmra.mrb[2].mxu0 %vm197_vm3, %v192_v37 }
 0x1b6   :  { %v267_v42 = vpop.f32.mrb[2].mxu0 }
 0x1b7   :  { %v268_v43 = vadd.f32 %v360_v41, %v267_v42  ;;  %v420_v44 = vpop.f32.mrb[3].mxu0 }
 0x1b9   :  { %v271_v45 = vmax.f32 %v268_v43, 0.0 }
 0x1bb   :  { %438 = vmatmul.mubr.msk.f32.vlgmr.msra.gmra.mrb[2].mxu1 %vm197_vm3, %v271_v45 }
 0x28e   :  { %v341_v47 = vpop.f32.mrb[2].mxu1 }
 0x28f   :  { %v349_v48 = vadd.f32 %v363_v46, %v341_v47  ;;  %v439_v49 = vpop.f32.mrb[3].mxu1 }
 0x291   :  { %v350_v50 = vmax.f32 %v349_v48, 0.0 }
 0x293   :  { %352 = vst.msk [vmem:[%s578_s3] sm:$0xff] %vm351_vm4, %v350_v50 }

</bundles_post_ra>
